<compile_context>
chip_gen: v7x
topology: tpu7x:2x2x1
jax: 0.10.0
libtpu: 0.0.40
codegen_flags: <defaults>
</compile_context>

<pallas_src>
import jax
import jax.numpy as jnp
from jax.experimental import pallas as pl
from jax.experimental.pallas import tpu as pltpu


def _round_up(x, m):
    return (x + m - 1) // m * m


def _linear_head_kernel(x_ref, w1_ref, b1_ref, w2_ref, b2_ref, o_ref):
    # x_ref:  (tb, D) f32/orig   w1_ref: (D, H) bf16   b1_ref: (1, H) f32
    # w2_ref: (H, C) bf16        b2_ref: (1, C) f32    o_ref:  (tb, C) out dtype
    x = x_ref[...].astype(w1_ref.dtype)            # in-kernel cast (no extra HBM pass)
    h = jnp.dot(x, w1_ref[...], preferred_element_type=jnp.float32)
    h = jnp.tanh(h + b1_ref[...])                  # bias + tanh in f32
    y = jnp.dot(h.astype(w2_ref.dtype), w2_ref[...],
                preferred_element_type=jnp.float32)
    o_ref[...] = (y + b2_ref[...]).astype(o_ref.dtype)


def pack_linear_head_params(w1, b1, w2, b2, compute_dtype=jnp.bfloat16):
    """Pre-pack weights once (transpose + cast) so repeated calls reuse them."""
    w1t = jnp.asarray(w1).T.astype(compute_dtype)            # (D, H)
    w2t = jnp.asarray(w2).T.astype(compute_dtype)            # (H, C)
    b1r = jnp.asarray(b1).astype(jnp.float32).reshape(1, -1)  # (1, H)
    b2r = jnp.asarray(b2).astype(jnp.float32).reshape(1, -1)  # (1, C)
    return w1t, b1r, w2t, b2r


def _choose_tb(B):
    if B <= 128:
        return B                       # single full-extent tile (always legal)
    # Large tiles amortize per-step overhead; keep >=4 grid steps so both v7x
    # TensorCores get work via the "parallel" batch axis.
    return min(1024, max(128, _round_up(pl.cdiv(B, 4), 128)))


def linear_head_apply(x, w1t, b1r, w2t, b2r, *, tb=None):
    """x: (B, D); w1t: (D, H); b1r: (1, H); w2t: (H, C); b2r: (1, C)."""
    B, D = x.shape
    Dw, H = w1t.shape
    Hw, C = w2t.shape
    assert D == Dw and H == Hw, "packed weight shapes do not match x"
    out_dtype = x.dtype

    if tb is None:
        tb = _choose_tb(B)
    tb = min(tb, B)
    n_tiles = pl.cdiv(B, tb)           # partial boundary block handled by Pallas

    # Resident (constant index_map) weights: single-buffer them only when the
    # saved VMEM actually matters (large D/H on v7x's 64 MiB VMEM).
    weight_bytes = (D * H + H * C) * w1t.dtype.itemsize
    resident_kw = {"pipeline_mode": pl.Buffered(1)} if weight_bytes >= (8 << 20) else {}

    # VMEM budget with headroom, capped below physical capacity (v7x = 64 MiB).
    vmem_needed = (
        2 * tb * D * x.dtype.itemsize              # double-buffered x tiles
        + 2 * tb * C * jnp.zeros((), out_dtype).dtype.itemsize  # out tiles
        + 2 * weight_bytes                          # resident weights (<=2 bufs)
        + 2 * (H + C) * 4                           # resident biases
        + 4 * tb * H                                # f32 hidden activations
    )
    try:
        vmem_cap = pltpu.get_tpu_info().vmem_capacity_bytes
    except Exception:  # pragma: no cover - conservative fallback (v7x size)
        vmem_cap = 64 << 20
    vmem_limit = int(min(max(2 * vmem_needed, 32 << 20), (vmem_cap * 3) // 4))

    grid_spec = pltpu.PrefetchScalarGridSpec(
        num_scalar_prefetch=0,
        grid=(n_tiles,),
        in_specs=[
            pl.BlockSpec((tb, D), lambda i: (i, 0)),                 # x streamed, unpadded
            pl.BlockSpec((D, H), lambda i: (0, 0), **resident_kw),   # W1^T resident
            pl.BlockSpec((1, H), lambda i: (0, 0), **resident_kw),   # b1 resident
            pl.BlockSpec((H, C), lambda i: (0, 0), **resident_kw),   # W2^T resident
            pl.BlockSpec((1, C), lambda i: (0, 0), **resident_kw),   # b2 resident
        ],
        out_specs=pl.BlockSpec((tb, C), lambda i: (i, 0)),           # unpadded C
    )

    return pl.pallas_call(
        _linear_head_kernel,
        out_shape=jax.ShapeDtypeStruct((B, C), out_dtype),
        grid_spec=grid_spec,
        compiler_params=pltpu.CompilerParams(
            dimension_semantics=("parallel",),
            vmem_limit_bytes=vmem_limit),
    )(x, w1t, b1r, w2t, b2r)


def linear_head(x, w1, b1, w2, b2, *, tb=None, compute_dtype=jnp.bfloat16):
    """Convenience wrapper: pack params then apply.  For repeated inference,
    call pack_linear_head_params once and reuse linear_head_apply."""
    packed = pack_linear_head_params(w1, b1, w2, b2, compute_dtype)
    return linear_head_apply(x, *packed, tb=tb)


if __name__ == "__main__":
    # Small shapes implied by the module: x is (batch, input_dim).
    batch, input_dim, hidden_dim, n_classes = 16, 32, 64, 8

    key = jax.random.PRNGKey(0)
    kx, k1, k2, k3, k4 = jax.random.split(key, 5)

    x = jax.random.normal(kx, (batch, input_dim), dtype=jnp.float32)

    # Deterministic init mimicking nn.Linear's U(-1/sqrt(fan_in), 1/sqrt(fan_in)).
    bound1 = 1.0 / (input_dim ** 0.5)
    w1 = jax.random.uniform(k1, (hidden_dim, input_dim), jnp.float32, -bound1, bound1)
    b1 = jax.random.uniform(k2, (hidden_dim,), jnp.float32, -bound1, bound1)
    bound2 = 1.0 / (hidden_dim ** 0.5)
    w2 = jax.random.uniform(k3, (n_classes, hidden_dim), jnp.float32, -bound2, bound2)
    b2 = jax.random.uniform(k4, (n_classes,), jnp.float32, -bound2, bound2)

    packed = pack_linear_head_params(w1, b1, w2, b2)   # one-time weight packing
    out = linear_head_apply(x, *packed)
    out = jax.block_until_ready(out)
    assert out.shape == (batch, n_classes)

    # Reference applying the same bf16 rounding the kernel uses (x, W1, h, W2
    # rounded; accumulation / bias / tanh in f32).
    f32 = jnp.float32
    xb = x.astype(jnp.bfloat16).astype(f32)
    w1b = w1.astype(jnp.bfloat16).astype(f32)
    w2b = w2.astype(jnp.bfloat16).astype(f32)
    h_ref = jnp.tanh(xb @ w1b.T + b1)
    hb = h_ref.astype(jnp.bfloat16).astype(f32)
    ref = hb @ w2b.T + b2
    assert jnp.allclose(out, ref, atol=1e-2, rtol=1e-2), "mismatch vs bf16-rounded reference"

    # Full-precision sanity check (loose tolerance for the bf16 compute dtype).
    ref_f32 = jnp.tanh(x @ w1.T + b1) @ w2.T + b2
    assert jnp.allclose(out, ref_f32, atol=5e-2, rtol=5e-2), "mismatch vs f32 reference"

    print("KERNEL_OK")
</pallas_src>

<mosaic_0001>
module attributes {stable_mosaic.version = 11 : i64} {
  func.func @_linear_head_kernel(%arg0: i32, %arg1: memref<16x32xf32, #tpu.memory_space<vmem>>, %arg2: memref<32x64xbf16, #tpu.memory_space<vmem>>, %arg3: memref<1x64xf32, #tpu.memory_space<vmem>>, %arg4: memref<64x8xbf16, #tpu.memory_space<vmem>>, %arg5: memref<1x8xf32, #tpu.memory_space<vmem>>, %arg6: memref<16x8xf32, #tpu.memory_space<vmem>>) attributes {dimension_semantics = [#tpu.dimension_semantics<parallel>], iteration_bounds = array<i64: 1>, scalar_prefetch = 0 : i64, scratch_operands = 0 : i64, tpu.core_type = #tpu.core_type<tc>, window_params = [{transform_indices = @transform_0, window_bounds = array<i64: 16, 32>}, {pipeline_mode = #tpu.pipeline_mode<synchronous>, transform_indices = @transform_1, window_bounds = array<i64: 32, 64>}, {pipeline_mode = #tpu.pipeline_mode<synchronous>, transform_indices = @transform_2, window_bounds = array<i64: 1, 64>}, {pipeline_mode = #tpu.pipeline_mode<synchronous>, transform_indices = @transform_3, window_bounds = array<i64: 64, 8>}, {pipeline_mode = #tpu.pipeline_mode<synchronous>, transform_indices = @transform_4, window_bounds = array<i64: 1, 8>}, {transform_indices = @transform_5, window_bounds = array<i64: 16, 8>}]} {
    %c0 = arith.constant 0 : index
    %c0_0 = arith.constant 0 : index
    %0 = vector.load %arg1[%c0, %c0_0] : memref<16x32xf32, #tpu.memory_space<vmem>>, vector<16x32xf32>
    %1 = arith.truncf %0 : vector<16x32xf32> to vector<16x32xbf16>
    %c0_1 = arith.constant 0 : index
    %c0_2 = arith.constant 0 : index
    %2 = vector.load %arg2[%c0_1, %c0_2] : memref<32x64xbf16, #tpu.memory_space<vmem>>, vector<32x64xbf16>
    %cst = arith.constant dense<0.000000e+00> : vector<16x64xf32>
    %3 = tpu.matmul %1, %2, %cst {dimension_numbers = #tpu.dot_dimension_numbers<[1], [0], [0], [1], [0, 0, 1, 1], [], []>} : vector<16x32xbf16>, vector<32x64xbf16>, vector<16x64xf32> -> vector<16x64xf32>
    %c0_3 = arith.constant 0 : index
    %c0_4 = arith.constant 0 : index
    %4 = vector.load %arg3[%c0_3, %c0_4] : memref<1x64xf32, #tpu.memory_space<vmem>>, vector<1x64xf32>
    %5 = vector.broadcast %4 : vector<1x64xf32> to vector<16x64xf32>
    %6 = arith.addf %3, %5 : vector<16x64xf32>
    %7 = math.tanh %6 : vector<16x64xf32>
    %8 = arith.truncf %7 : vector<16x64xf32> to vector<16x64xbf16>
    %c0_5 = arith.constant 0 : index
    %c0_6 = arith.constant 0 : index
    %9 = vector.load %arg4[%c0_5, %c0_6] : memref<64x8xbf16, #tpu.memory_space<vmem>>, vector<64x8xbf16>
    %cst_7 = arith.constant dense<0.000000e+00> : vector<16x8xf32>
    %10 = tpu.matmul %8, %9, %cst_7 {dimension_numbers = #tpu.dot_dimension_numbers<[1], [0], [0], [1], [0, 0, 1, 1], [], []>} : vector<16x64xbf16>, vector<64x8xbf16>, vector<16x8xf32> -> vector<16x8xf32>
    %c0_8 = arith.constant 0 : index
    %c0_9 = arith.constant 0 : index
    %11 = vector.load %arg5[%c0_8, %c0_9] : memref<1x8xf32, #tpu.memory_space<vmem>>, vector<1x8xf32>
    %12 = vector.broadcast %11 : vector<1x8xf32> to vector<16x8xf32>
    %13 = arith.addf %10, %12 : vector<16x8xf32>
    %c0_10 = arith.constant 0 : index
    %c0_11 = arith.constant 0 : index
    %14 = vector.load %arg6[%c0_10, %c0_11] : memref<16x8xf32, #tpu.memory_space<vmem>>, vector<16x8xf32>
    tpu.vector_store %arg6[%c0_10, %c0_11], %13 {strides = array<i32>} : memref<16x8xf32, #tpu.memory_space<vmem>>, vector<16x8xf32>,
    return
  }
  func.func @transform_0(%arg0: i32) -> (i32, i32) {
    %c0_i32 = arith.constant 0 : i32
    %c0_i32_0 = arith.constant 0 : i32
    return %arg0, %c0_i32 : i32, i32
  }
  func.func @transform_1(%arg0: i32) -> (i32, i32) {
    %c0_i32 = arith.constant 0 : i32
    %c0_i32_0 = arith.constant 0 : i32
    %c0_i32_1 = arith.constant 0 : i32
    return %c0_i32, %c0_i32_0 : i32, i32
  }
  func.func @transform_2(%arg0: i32) -> (i32, i32) {
    %c0_i32 = arith.constant 0 : i32
    %c0_i32_0 = arith.constant 0 : i32
    %c0_i32_1 = arith.constant 0 : i32
    return %c0_i32, %c0_i32_0 : i32, i32
  }
  func.func @transform_3(%arg0: i32) -> (i32, i32) {
    %c0_i32 = arith.constant 0 : i32
    %c0_i32_0 = arith.constant 0 : i32
    %c0_i32_1 = arith.constant 0 : i32
    return %c0_i32, %c0_i32_0 : i32, i32
  }
  func.func @transform_4(%arg0: i32) -> (i32, i32) {
    %c0_i32 = arith.constant 0 : i32
    %c0_i32_0 = arith.constant 0 : i32
    %c0_i32_1 = arith.constant 0 : i32
    return %c0_i32, %c0_i32_0 : i32, i32
  }
  func.func @transform_5(%arg0: i32) -> (i32, i32) {
    %c0_i32 = arith.constant 0 : i32
    %c0_i32_0 = arith.constant 0 : i32
    return %arg0, %c0_i32 : i32, i32
  }
}

</mosaic_0001>

<bundles_post_ra>
// kernel: tpu_custom_call.1
= control target key start
LH: loop header
LB: loop body
LE: loop exit
PB: predicated region body
PF: predicated region fallthrough
CT: control target
= control target key end

     0   :  { %v236_v0 = vmov 0.0   ;;  %vm237_vm0 = vmmov 0   ;;  %vm47_vm1 = vcmask 261120   ;;  %vm134_vm2 = vcmask 523264   ;;  %s304_s1 = inlined_call_operand.vmem [shape: bf16[32,64], index: 1, kind: input, shape index: {}]   ;;  %s305_s0 = inlined_call_operand.vmem [shape: f32[16,32], index: 0, kind: input, shape index: {}]   ;;  %s306_s3 = inlined_call_operand.vmem [shape: bf16[64,8], index: 3, kind: input, shape index: {}]   ;;  %s307_s2 = inlined_call_operand.vmem [shape: f32[1,64], index: 2, kind: input, shape index: {}]   ;;  %s308_s4 = inlined_call_operand.vmem [shape: f32[1,8], index: 4, kind: input, shape index: {}]   ;;  %s309_s5 = inlined_call_operand.vmem [shape: f32[16,8], index: 5, kind: output, shape index: {}]  }
   0x1   :  { %204 = vmatprep.subr.bf16.mxu0 %v236_v0  ;;  %v226_v1 = vld [vmem:[%s304_s1] sm:$0xff]   ;;  %208 = vmatprep.mubr.msk.bf16.mxu0 %vm237_vm0, %v236_v0  ;;  %v227_v2 = vld [vmem:[%s304_s1 + $0x8] sm:$0xff]   ;;  %v230_v8 = vld [vmem:[%s306_s3 + $0x10] sm:$0xff]   ;;  %vm179_vm3 = vcmask 64512  }
   0x2   :  { %212 = vmatprep.subr.bf16.mxu1 %v236_v0  ;;  %220 = vmatprep.mubr.msk.bf16.mxu1 %vm237_vm0, %v236_v0  ;;  %v21_v3 = vld [vmem:[%s305_s0] sm:$0xff]  ;;  %v22_v4 = vld [vmem:[%s305_s0 + $0x8] sm:$0xff]  ;;  %v231_v9 = vld [vmem:[%s306_s3 + $0x18] sm:$0xff]  }
   0x3   :  { %205 = vmatpush3.bf16.msra.mxu0 %v226_v1  ;;  %v23_v5 = vpack.c.bf16 %v22_v4, %v21_v3  ;;  %v228_v6 = vld [vmem:[%s306_s3] sm:$0xff]   ;;  %v229_v7 = vld [vmem:[%s306_s3 + $0x8] sm:$0xff]  }
   0x4   :  { %206 = vmatprep.subr.bf16.mxu0 %v236_v0  ;;  %213 = vmatpush3.bf16.msra.mxu1 %v228_v6  ;;  %v186_v10 = vld [vmem:[%s307_s2] ss:$0 sm:$0xff] }
   0x5   :  { %214 = vmatprep.subr.bf16.mxu1 %v236_v0  ;;  %v190_v20 = vld [vmem:[%s308_s4] ss:$0 sm:$0xff] }
   0x7   :  { %207 = vmatpush3.bf16.msra.mxu0 %v227_v2 }
   0x8   :  { %215 = vmatpush3.bf16.msra.mxu1 %v229_v7 }
   0x9   :  { %216 = vmatprep.subr.bf16.mxu1 %v236_v0 }
   0xa   :  { %209 = vmatmul.mubr.msk.bf16.vlgmr.msra.gmra.mrb[0].mxu0 %vm47_vm1, %v23_v5 }
   0xc   :  { %217 = vmatpush3.bf16.msra.mxu1 %v230_v8 }
   0xd   :  { %218 = vmatprep.subr.bf16.mxu1 %v236_v0 }
  0x10   :  { %219 = vmatpush3.bf16.msra.mxu1 %v231_v9 }
  0xdd   :  { %v85_v11 = vpop.f32.mrb[0].mxu0 }
  0xde   :  { %v86_v12 = vadd.f32 %v186_v10, %v85_v11  ;;  %v210_v13 = vpop.f32.mrb[1].mxu0 }
  0xdf   :  { %v88_v14 = vpop.f32.mrb[2].mxu0 }
  0xe0   :  { %v89_v15 = vadd.f32 %v186_v10, %v88_v14  ;;  %v211_v16 = vpop.f32.mrb[3].mxu0  ;;  %232 = vtanh.f32 %v86_v12 }
  0xe2   :  { %234 = vtanh.f32 %v89_v15 }
  0xea   :  { %v233_v17 = vpop.eup %232 }
  0xec   :  { %v235_v18 = vpop.eup %234 }
  0xed   :  { %v94_v19 = vpack.c.bf16 %v235_v18, %v233_v17 }
  0xef   :  { %221 = vmatmul.mubr.msk.bf16.vlgmr.msra.gmra.mrb[0].mxu1 %vm134_vm2, %v94_v19 }
 0x1c2   :  { %v172_v21 = vpop.f32.mrb[0].mxu1 }
 0x1c3   :  { %v173_v22 = vadd.f32 %v190_v20, %v172_v21  ;;  %v222_v23 = vpop.f32.mrb[1].mxu1 }
 0x1c4   :  { %v175_v24 = vpop.f32.mrb[2].mxu1 }
 0x1c5   :  { %180 = vst.msk [vmem:[%s309_s5] sm:$0xff] %vm179_vm3, %v173_v22  ;;  %v176_v25 = vadd.f32 %v190_v20, %v175_v24  ;;  %v223_v26 = vpop.f32.mrb[3].mxu1 }
 0x1c7   :  { %181 = vst.msk [vmem:[%s309_s5 + $0x8] sm:$0xff] %vm179_vm3, %v176_v25 }

</bundles_post_ra>
